<compile_context>
chip_gen: v7x
topology: tpu7x:2x2x1
jax: 0.10.0
libtpu: 0.0.40
codegen_flags: <defaults>
</compile_context>

<pallas_src>
import functools

import numpy as np
import jax
import jax.numpy as jnp
from jax import lax
from jax.experimental import pallas as pl
from jax.experimental.pallas import tpu as pltpu

# ----------------------------------------------------------------------------
# Constants: cv2.getGaussianKernel(5, 3) taps and Canny parameters.
# ----------------------------------------------------------------------------
_G1 = np.exp(-((np.arange(5) - 2.0) ** 2) / (2.0 * 3.0 ** 2))
_G1 = _G1 / _G1.sum()
GAUSS_TAPS = tuple(np.float32(v) for v in _G1)        # symmetric 5-tap, sums to 1

TAN_22_5 = 0.41421356237309503
TAN_67_5 = 2.414213562373095
CANNY_THRESH = 20.0


def _round_up(x, m):
    return ((x + m - 1) // m) * m


def _tpu_vmem_capacity():
    """Physical per-core VMEM in bytes; conservative 64 MiB fallback (v7x)."""
    try:
        info = pltpu.get_tpu_info()
        cap = int(getattr(info, "vmem_capacity_bytes", 0))
        if cap > 0:
            return cap
    except Exception:
        pass
    return 64 * 1024 * 1024


def _sizing(w_in):
    """Generation-aware (tile_h, vmem_limit_bytes)."""
    cap = _tpu_vmem_capacity()
    if cap >= 100 * 1024 * 1024:          # v5e / v6e: 128 MiB physical VMEM
        temp_budget = 40 * 1024 * 1024
        vmem_limit = 96 * 1024 * 1024
        max_th = 512
    else:                                 # v7x: 64 MiB per TensorCore
        temp_budget = 16 * 1024 * 1024
        vmem_limit = 40 * 1024 * 1024
        max_th = 256
    per_row = 24 * w_in * 4               # ~24 live full-width f32 rows / tile row
    th = temp_budget // per_row - 16
    th = int(max(16, min(max_th, th)))
    th = (th // 16) * 16
    return th, vmem_limit


def _canny_kernel(xp_ref, o_ref, *, h, w, tile_h, wp):
    """One (batch, row-tile) grid step.

    xp_ref: (1, tile_h + 16, wp + 8) bfloat16.  Local row l / col p correspond to
            image row (r0 - 8 + l) / image col (p - 4).  The wrapper supplies
            reflect-101 content in the +-2 frame around the image and don't-care
            filler beyond that.
    o_ref : (1, tile_h, wp) bfloat16 (exact 0.0 / 1.0); image col j at lane j.
    """
    th = tile_h
    r0 = pl.program_id(1) * th                      # first output row (image coords)
    t0, t1, t2 = GAUSS_TAPS[0], GAUSS_TAPS[1], GAUSS_TAPS[2]

    # ---- 5x5 Gaussian blur (sigma=3), separable, symmetric taps ---------------
    # Vertical pass: feed directly from the bf16 ref; each slice is converted to
    # f32 inline (single-use, fuses) so no full-slab f32 copy is materialized.
    nb = th + 4                                     # blur rows: image rows [r0-2, r0+th+2)
    x0 = xp_ref[0, 4:4 + nb, :].astype(jnp.float32)
    x1 = xp_ref[0, 5:5 + nb, :].astype(jnp.float32)
    x2 = xp_ref[0, 6:6 + nb, :].astype(jnp.float32)
    x3 = xp_ref[0, 7:7 + nb, :].astype(jnp.float32)
    x4 = xp_ref[0, 8:8 + nb, :].astype(jnp.float32)
    bv = t0 * (x0 + x4) + t1 * (x1 + x3) + t2 * x2  # 3 muls instead of 5

    wb = wp + 4                                     # blur cols: image cols [-2, wp+2)
    blur = (t0 * (bv[:, 0:wb] + bv[:, 4:4 + wb])
            + t1 * (bv[:, 1:1 + wb] + bv[:, 3:3 + wb])
            + t2 * bv[:, 2:2 + wb])
    # cv2.GaussianBlur writes back to uint8 before Canny.  Taps sum to 1 and
    # inputs are 0..255, so no clip is needed after rounding.
    # TODO(synk): cv2 fixed-point rounds half-up; jnp.round is half-to-even.
    blur = jnp.round(blur)

    # ---- Sobel 3x3 (separable), BORDER_REPLICATE at the image border ----------
    ns = th + 2                                     # rows: image rows [r0-1, r0+th+1)
    b_up = blur[0:ns, :]                            # blur[row-1]
    b_mid = blur[1:ns + 1, :]                       # blur[row]
    b_dn = blur[2:ns + 2, :]                        # blur[row+1]

    # Narrow (ns,1)/(1,wg) masks; only the first/last row tile can match the
    # row-border conditions, interior tiles pay just the broadcast selects.
    row_c = lax.broadcasted_iota(jnp.int32, (ns, 1), 0) + (r0 - 1)   # centre image row
    b_up = jnp.where(row_c == 0, b_mid, b_up)       # replicate top image row
    b_dn = jnp.where(row_c == h - 1, b_mid, b_dn)   # replicate bottom image row

    sxv = b_up + 2.0 * b_mid + b_dn                 # vertical [1, 2, 1]
    syv = b_dn - b_up                               # vertical [-1, 0, 1]

    wg = wp + 2                                     # cols: image cols [-1, wp+1)
    col_c = lax.broadcasted_iota(jnp.int32, (1, wg), 1) - 1          # centre image col
    left_e = col_c == 0
    right_e = col_c == w - 1

    sxv_m = sxv[:, 1:1 + wg]
    sxv_l = jnp.where(left_e, sxv_m, sxv[:, 0:wg])      # replicate left image col
    sxv_r = jnp.where(right_e, sxv_m, sxv[:, 2:2 + wg])  # replicate right image col
    gx = sxv_r - sxv_l                              # horizontal [-1, 0, 1]

    syv_m = syv[:, 1:1 + wg]
    syv_l = jnp.where(left_e, syv_m, syv[:, 0:wg])
    syv_r = jnp.where(right_e, syv_m, syv[:, 2:2 + wg])
    gy = syv_l + 2.0 * syv_m + syv_r                # horizontal [1, 2, 1]

    # ---- L1 gradient magnitude (cv2 default); zero outside the image so NMS
    #      out-of-bounds neighbours compare against 0 ---------------------------
    inside = ((row_c >= 0) & (row_c < h)) & ((col_c >= 0) & (col_c < w))
    mag = jnp.where(inside, jnp.abs(gx) + jnp.abs(gy), 0.0)

    # ---- Non-maximum suppression + threshold (low == high == 20) --------------
    n_c = mag[1:th + 1, 1:wp + 1]
    gxc = gx[1:th + 1, 1:wp + 1]
    gyc = gy[1:th + 1, 1:wp + 1]
    ax = jnp.abs(gxc)
    ay = jnp.abs(gyc)
    horiz = ay <= ax * TAN_22_5                     # gradient ~ horizontal -> L/R
    vert = ay > ax * TAN_67_5                       # gradient ~ vertical   -> U/D
    diag = (gxc * gyc) >= 0.0                       # which diagonal otherwise

    prev_n = jnp.where(horiz, mag[1:th + 1, 0:wp],
             jnp.where(vert, mag[0:th, 1:wp + 1],
             jnp.where(diag, mag[0:th, 0:wp], mag[0:th, 2:wp + 2])))
    next_n = jnp.where(horiz, mag[1:th + 1, 2:wp + 2],
             jnp.where(vert, mag[2:th + 2, 1:wp + 1],
             jnp.where(diag, mag[2:th + 2, 2:wp + 2], mag[2:th + 2, 0:wp])))

    keep = (n_c > prev_n) & (n_c >= next_n)
    edge = keep & (n_c > CANNY_THRESH)

    o_ref[0] = edge.astype(o_ref.dtype)             # exact 0.0 / 1.0 in bf16


def canny_edge_detector(image: jax.Array) -> jax.Array:
    """image: (B, 1, H, W) float32 in [0, 1]  ->  (B, 1, H, W) float32 in {0, 1}."""
    b, c, h, w = image.shape
    assert c == 1, "module squeezes the channel dim; C must be 1"
    assert h >= 3 and w >= 3, "reflect-101 padding requires H, W >= 3"

    wp = _round_up(w, 128)               # lane-dense output width
    w_in = wp + 8                        # input width: 4-column halo on each side
    th, vmem_limit = _sizing(w_in)       # generation-aware row-tile height
    th = min(th, _round_up(h, 16))
    hp = _round_up(h, th)
    nt = hp // th

    # uint8 quantization: img*255 then truncation (the np.uint8 cast).
    x255 = jnp.floor(jnp.clip(image[:, 0].astype(jnp.float32) * 255.0, 0.0, 255.0))
    # Integers 0..255 are exact in bfloat16 -> halves the HBM->VMEM DMA bytes.
    x255 = x255.astype(jnp.bfloat16)

    # BORDER_REFLECT_101 frame of width 2 (what the 5x5 Gaussian actually sees),
    # then don't-care filler to reach the tiled/haloed layout:
    #   rows: image at [8, 8+h) of hp+16 ;  cols: image at [4, 4+w) of wp+8.
    xr = jnp.pad(x255, ((0, 0), (2, 2), (2, 2)), mode="reflect")
    xp = jnp.pad(xr, ((0, 0), (6, hp - h + 6), (2, w_in - w - 6)), mode="edge")

    if nt == 1:
        # Single row tile: plain full-extent block (hp + 16 == th + 16).
        in_spec = pl.BlockSpec((1, th + 16, w_in), lambda bi, ti: (bi, 0, 0))
    else:
        # Overlapping row windows (tile + 8-row halo each side) via element-offset
        # indexing on the row axis; offsets and window height are multiples of 16
        # so bf16 sublane tiling stays aligned.
        in_spec = pl.BlockSpec(
            (pl.Blocked(1), pl.Element(th + 16), pl.Blocked(w_in)),
            lambda bi, ti: (bi, ti * th, 0))

    kernel = functools.partial(_canny_kernel, h=h, w=w, tile_h=th, wp=wp)

    out = pl.pallas_call(
        kernel,
        out_shape=jax.ShapeDtypeStruct((b, hp, wp), jnp.bfloat16),
        grid_spec=pltpu.PrefetchScalarGridSpec(
            num_scalar_prefetch=0,
            grid=(b, nt),
            in_specs=[in_spec],
            out_specs=pl.BlockSpec((1, th, wp), lambda bi, ti: (bi, ti, 0)),
        ),
        compiler_params=pltpu.CompilerParams(
            # Row tiles are fully independent -> let Mosaic shard both grid axes
            # across TensorCores (matters on v7x even when B == 1).
            dimension_semantics=("parallel", "parallel"),
            vmem_limit_bytes=vmem_limit,
        ),
    )(xp)

    # Crop the lane/row padding, upcast to f32, restore the (B, 1, H, W) layout.
    return out[:, :h, :w].astype(jnp.float32)[:, None, :, :]


if __name__ == "__main__":
    key = jax.random.PRNGKey(0)
    B, C, H, W = 2, 1, 16, 16   # module requires C == 1 (it squeezes the channel)

    # Smooth-ish synthetic image in [0, 1] with a bright square (produces edges).
    base = jax.random.uniform(key, (B, C, H, W), dtype=jnp.float32) * 0.1
    yy, xx = jnp.meshgrid(jnp.arange(H), jnp.arange(W), indexing="ij")
    square = ((yy >= 4) & (yy < 12) & (xx >= 4) & (xx < 12)).astype(jnp.float32)
    img = jnp.clip(base + 0.8 * square[None, None, :, :], 0.0, 1.0)

    edges = canny_edge_detector(img)
    jax.block_until_ready(edges)

    assert edges.shape == (B, 1, H, W)
    assert edges.dtype == jnp.float32
    assert bool(jnp.all((edges == 0.0) | (edges == 1.0)))
    print("KERNEL_OK")
</pallas_src>

<mosaic_0001>
module attributes {stable_mosaic.version = 11 : i64} {
  func.func @_canny_kernel(%arg0: i32, %arg1: i32, %arg2: memref<1x32x136xbf16, #tpu.memory_space<vmem>>, %arg3: memref<1x16x128xbf16, #tpu.memory_space<vmem>>) attributes {dimension_semantics = [#tpu.dimension_semantics<parallel>, #tpu.dimension_semantics<parallel>], iteration_bounds = array<i64: 2, 1>, scalar_prefetch = 0 : i64, scratch_operands = 0 : i64, tpu.core_type = #tpu.core_type<tc>, window_params = [{transform_indices = @transform_0, window_bounds = array<i64: 1, 32, 136>}, {transform_indices = @transform_1, window_bounds = array<i64: 1, 16, 128>}]} {
    %c16_i32 = arith.constant 16 : i32
    %0 = arith.muli %arg1, %c16_i32 : i32
    %c0 = arith.constant 0 : index
    %c4 = arith.constant 4 : index
    %c0_0 = arith.constant 0 : index
    %1 = vector.load %arg2[%c0, %c4, %c0_0] : memref<1x32x136xbf16, #tpu.memory_space<vmem>>, vector<1x20x136xbf16>
    %2 = vector.shape_cast %1 : vector<1x20x136xbf16> to vector<20x136xbf16>
    %3 = arith.extf %2 : vector<20x136xbf16> to vector<20x136xf32>
    %c0_1 = arith.constant 0 : index
    %c5 = arith.constant 5 : index
    %c0_2 = arith.constant 0 : index
    %4 = vector.load %arg2[%c0_1, %c5, %c0_2] : memref<1x32x136xbf16, #tpu.memory_space<vmem>>, vector<1x20x136xbf16>
    %5 = vector.shape_cast %4 : vector<1x20x136xbf16> to vector<20x136xbf16>
    %6 = arith.extf %5 : vector<20x136xbf16> to vector<20x136xf32>
    %c0_3 = arith.constant 0 : index
    %c6 = arith.constant 6 : index
    %c0_4 = arith.constant 0 : index
    %7 = vector.load %arg2[%c0_3, %c6, %c0_4] : memref<1x32x136xbf16, #tpu.memory_space<vmem>>, vector<1x20x136xbf16>
    %8 = vector.shape_cast %7 : vector<1x20x136xbf16> to vector<20x136xbf16>
    %9 = arith.extf %8 : vector<20x136xbf16> to vector<20x136xf32>
    %c0_5 = arith.constant 0 : index
    %c7 = arith.constant 7 : index
    %c0_6 = arith.constant 0 : index
    %10 = vector.load %arg2[%c0_5, %c7, %c0_6] : memref<1x32x136xbf16, #tpu.memory_space<vmem>>, vector<1x20x136xbf16>
    %11 = vector.shape_cast %10 : vector<1x20x136xbf16> to vector<20x136xbf16>
    %12 = arith.extf %11 : vector<20x136xbf16> to vector<20x136xf32>
    %c0_7 = arith.constant 0 : index
    %c8 = arith.constant 8 : index
    %c0_8 = arith.constant 0 : index
    %13 = vector.load %arg2[%c0_7, %c8, %c0_8] : memref<1x32x136xbf16, #tpu.memory_space<vmem>>, vector<1x20x136xbf16>
    %14 = vector.shape_cast %13 : vector<1x20x136xbf16> to vector<20x136xbf16>
    %15 = arith.extf %14 : vector<20x136xbf16> to vector<20x136xf32>
    %16 = arith.addf %3, %15 : vector<20x136xf32>
    %cst = arith.constant 0.178203255 : f32
    %17 = vector.broadcast %cst : f32 to vector<20x136xf32>
    %18 = arith.mulf %17, %16 : vector<20x136xf32>
    %19 = arith.addf %6, %12 : vector<20x136xf32>
    %cst_9 = arith.constant 0.210522279 : f32
    %20 = vector.broadcast %cst_9 : f32 to vector<20x136xf32>
    %21 = arith.mulf %20, %19 : vector<20x136xf32>
    %22 = arith.addf %18, %21 : vector<20x136xf32>
    %cst_10 = arith.constant 0.222548932 : f32
    %23 = vector.broadcast %cst_10 : f32 to vector<20x136xf32>
    %24 = arith.mulf %23, %9 : vector<20x136xf32>
    %25 = arith.addf %22, %24 : vector<20x136xf32>
    %26 = vector.extract_strided_slice %25 {offsets = [0, 0], sizes = [20, 132], strides = [1, 1]} : vector<20x136xf32> to vector<20x132xf32>
    %27 = vector.extract_strided_slice %25 {offsets = [0, 4], sizes = [20, 132], strides = [1, 1]} : vector<20x136xf32> to vector<20x132xf32>
    %28 = arith.addf %26, %27 : vector<20x132xf32>
    %cst_11 = arith.constant 0.178203255 : f32
    %29 = vector.broadcast %cst_11 : f32 to vector<20x132xf32>
    %30 = arith.mulf %29, %28 : vector<20x132xf32>
    %31 = vector.extract_strided_slice %25 {offsets = [0, 1], sizes = [20, 132], strides = [1, 1]} : vector<20x136xf32> to vector<20x132xf32>
    %32 = vector.extract_strided_slice %25 {offsets = [0, 3], sizes = [20, 132], strides = [1, 1]} : vector<20x136xf32> to vector<20x132xf32>
    %33 = arith.addf %31, %32 : vector<20x132xf32>
    %cst_12 = arith.constant 0.210522279 : f32
    %34 = vector.broadcast %cst_12 : f32 to vector<20x132xf32>
    %35 = arith.mulf %34, %33 : vector<20x132xf32>
    %36 = arith.addf %30, %35 : vector<20x132xf32>
    %37 = vector.extract_strided_slice %25 {offsets = [0, 2], sizes = [20, 132], strides = [1, 1]} : vector<20x136xf32> to vector<20x132xf32>
    %cst_13 = arith.constant 0.222548932 : f32
    %38 = vector.broadcast %cst_13 : f32 to vector<20x132xf32>
    %39 = arith.mulf %38, %37 : vector<20x132xf32>
    %40 = arith.addf %36, %39 : vector<20x132xf32>
    %41 = math.roundeven %40 : vector<20x132xf32>
    %42 = vector.extract_strided_slice %41 {offsets = [0, 0], sizes = [18, 132], strides = [1, 1]} : vector<20x132xf32> to vector<18x132xf32>
    %43 = vector.extract_strided_slice %41 {offsets = [1, 0], sizes = [18, 132], strides = [1, 1]} : vector<20x132xf32> to vector<18x132xf32>
    %44 = vector.extract_strided_slice %41 {offsets = [2, 0], sizes = [18, 132], strides = [1, 1]} : vector<20x132xf32> to vector<18x132xf32>
    %45 = tpu.iota {dimensions = array<i32: 0>} : vector<18x1xi32>
    %c1_i32 = arith.constant 1 : i32
    %46 = arith.subi %0, %c1_i32 : i32
    %47 = vector.broadcast %46 : i32 to vector<18x1xi32>
    %48 = arith.addi %45, %47 : vector<18x1xi32>
    %c0_i32 = arith.constant 0 : i32
    %49 = vector.broadcast %c0_i32 : i32 to vector<18x1xi32>
    %50 = arith.cmpi eq, %48, %49 : vector<18x1xi32>
    %51 = vector.shape_cast %50 : vector<18x1xi1> to vector<18x1xi1>
    %52 = vector.broadcast %51 : vector<18x1xi1> to vector<18x132xi1>
    %53 = arith.select %52, %43, %42 : vector<18x132xi1>, vector<18x132xf32>
    %c15_i32 = arith.constant 15 : i32
    %54 = vector.broadcast %c15_i32 : i32 to vector<18x1xi32>
    %55 = arith.cmpi eq, %48, %54 : vector<18x1xi32>
    %56 = vector.shape_cast %55 : vector<18x1xi1> to vector<18x1xi1>
    %57 = vector.broadcast %56 : vector<18x1xi1> to vector<18x132xi1>
    %58 = arith.select %57, %43, %44 : vector<18x132xi1>, vector<18x132xf32>
    %cst_14 = arith.constant 2.000000e+00 : f32
    %59 = vector.broadcast %cst_14 : f32 to vector<18x132xf32>
    %60 = arith.mulf %59, %43 : vector<18x132xf32>
    %61 = arith.addf %53, %60 : vector<18x132xf32>
    %62 = arith.addf %61, %58 : vector<18x132xf32>
    %63 = arith.subf %58, %53 : vector<18x132xf32>
    %64 = tpu.iota {dimensions = array<i32: 1>} : vector<1x130xi32>
    %c1_i32_15 = arith.constant 1 : i32
    %65 = vector.broadcast %c1_i32_15 : i32 to vector<1x130xi32>
    %66 = arith.subi %64, %65 : vector<1x130xi32>
    %c0_i32_16 = arith.constant 0 : i32
    %67 = vector.broadcast %c0_i32_16 : i32 to vector<1x130xi32>
    %68 = arith.cmpi eq, %66, %67 : vector<1x130xi32>
    %c15_i32_17 = arith.constant 15 : i32
    %69 = vector.broadcast %c15_i32_17 : i32 to vector<1x130xi32>
    %70 = arith.cmpi eq, %66, %69 : vector<1x130xi32>
    %71 = vector.extract_strided_slice %62 {offsets = [0, 1], sizes = [18, 130], strides = [1, 1]} : vector<18x132xf32> to vector<18x130xf32>
    %72 = vector.extract_strided_slice %62 {offsets = [0, 0], sizes = [18, 130], strides = [1, 1]} : vector<18x132xf32> to vector<18x130xf32>
    %73 = vector.shape_cast %68 : vector<1x130xi1> to vector<1x130xi1>
    %74 = vector.broadcast %73 : vector<1x130xi1> to vector<18x130xi1>
    %75 = arith.select %74, %71, %72 : vector<18x130xi1>, vector<18x130xf32>
    %76 = vector.extract_strided_slice %62 {offsets = [0, 2], sizes = [18, 130], strides = [1, 1]} : vector<18x132xf32> to vector<18x130xf32>
    %77 = vector.shape_cast %70 : vector<1x130xi1> to vector<1x130xi1>
    %78 = vector.broadcast %77 : vector<1x130xi1> to vector<18x130xi1>
    %79 = arith.select %78, %71, %76 : vector<18x130xi1>, vector<18x130xf32>
    %80 = arith.subf %79, %75 : vector<18x130xf32>
    %81 = vector.extract_strided_slice %63 {offsets = [0, 1], sizes = [18, 130], strides = [1, 1]} : vector<18x132xf32> to vector<18x130xf32>
    %82 = vector.extract_strided_slice %63 {offsets = [0, 0], sizes = [18, 130], strides = [1, 1]} : vector<18x132xf32> to vector<18x130xf32>
    %83 = vector.shape_cast %68 : vector<1x130xi1> to vector<1x130xi1>
    %84 = vector.broadcast %83 : vector<1x130xi1> to vector<18x130xi1>
    %85 = arith.select %84, %81, %82 : vector<18x130xi1>, vector<18x130xf32>
    %86 = vector.extract_strided_slice %63 {offsets = [0, 2], sizes = [18, 130], strides = [1, 1]} : vector<18x132xf32> to vector<18x130xf32>
    %87 = vector.shape_cast %70 : vector<1x130xi1> to vector<1x130xi1>
    %88 = vector.broadcast %87 : vector<1x130xi1> to vector<18x130xi1>
    %89 = arith.select %88, %81, %86 : vector<18x130xi1>, vector<18x130xf32>
    %cst_18 = arith.constant 2.000000e+00 : f32
    %90 = vector.broadcast %cst_18 : f32 to vector<18x130xf32>
    %91 = arith.mulf %90, %81 : vector<18x130xf32>
    %92 = arith.addf %85, %91 : vector<18x130xf32>
    %93 = arith.addf %92, %89 : vector<18x130xf32>
    %c0_i32_19 = arith.constant 0 : i32
    %94 = vector.broadcast %c0_i32_19 : i32 to vector<18x1xi32>
    %95 = arith.cmpi sge, %48, %94 : vector<18x1xi32>
    %c16_i32_20 = arith.constant 16 : i32
    %96 = vector.broadcast %c16_i32_20 : i32 to vector<18x1xi32>
    %97 = arith.cmpi slt, %48, %96 : vector<18x1xi32>
    %98 = arith.andi %95, %97 : vector<18x1xi1>
    %c0_i32_21 = arith.constant 0 : i32
    %99 = vector.broadcast %c0_i32_21 : i32 to vector<1x130xi32>
    %100 = arith.cmpi sge, %66, %99 : vector<1x130xi32>
    %c16_i32_22 = arith.constant 16 : i32
    %101 = vector.broadcast %c16_i32_22 : i32 to vector<1x130xi32>
    %102 = arith.cmpi slt, %66, %101 : vector<1x130xi32>
    %103 = arith.andi %100, %102 : vector<1x130xi1>
    %104 = vector.broadcast %98 : vector<18x1xi1> to vector<18x130xi1>
    %105 = vector.broadcast %103 : vector<1x130xi1> to vector<18x130xi1>
    %106 = arith.andi %104, %105 : vector<18x130xi1>
    %107 = math.absf %80 : vector<18x130xf32>
    %108 = math.absf %93 : vector<18x130xf32>
    %109 = arith.addf %107, %108 : vector<18x130xf32>
    %cst_23 = arith.constant 0.000000e+00 : f32
    %110 = vector.broadcast %cst_23 : f32 to vector<18x130xf32>
    %111 = arith.select %106, %109, %110 : vector<18x130xi1>, vector<18x130xf32>
    %112 = vector.extract_strided_slice %111 {offsets = [1, 1], sizes = [16, 128], strides = [1, 1]} : vector<18x130xf32> to vector<16x128xf32>
    %113 = vector.extract_strided_slice %80 {offsets = [1, 1], sizes = [16, 128], strides = [1, 1]} : vector<18x130xf32> to vector<16x128xf32>
    %114 = vector.extract_strided_slice %93 {offsets = [1, 1], sizes = [16, 128], strides = [1, 1]} : vector<18x130xf32> to vector<16x128xf32>
    %115 = math.absf %113 : vector<16x128xf32>
    %116 = math.absf %114 : vector<16x128xf32>
    %cst_24 = arith.constant 0.414213568 : f32
    %117 = vector.broadcast %cst_24 : f32 to vector<16x128xf32>
    %118 = arith.mulf %115, %117 : vector<16x128xf32>
    %119 = arith.cmpf ole, %116, %118 : vector<16x128xf32>
    %cst_25 = arith.constant 2.41421366 : f32
    %120 = vector.broadcast %cst_25 : f32 to vector<16x128xf32>
    %121 = arith.mulf %115, %120 : vector<16x128xf32>
    %122 = arith.cmpf ogt, %116, %121 : vector<16x128xf32>
    %123 = arith.mulf %113, %114 : vector<16x128xf32>
    %cst_26 = arith.constant 0.000000e+00 : f32
    %124 = vector.broadcast %cst_26 : f32 to vector<16x128xf32>
    %125 = arith.cmpf oge, %123, %124 : vector<16x128xf32>
    %126 = vector.extract_strided_slice %111 {offsets = [1, 0], sizes = [16, 128], strides = [1, 1]} : vector<18x130xf32> to vector<16x128xf32>
    %127 = vector.extract_strided_slice %111 {offsets = [0, 1], sizes = [16, 128], strides = [1, 1]} : vector<18x130xf32> to vector<16x128xf32>
    %128 = vector.extract_strided_slice %111 {offsets = [0, 0], sizes = [16, 128], strides = [1, 1]} : vector<18x130xf32> to vector<16x128xf32>
    %129 = vector.extract_strided_slice %111 {offsets = [0, 2], sizes = [16, 128], strides = [1, 1]} : vector<18x130xf32> to vector<16x128xf32>
    %130 = arith.select %125, %128, %129 : vector<16x128xi1>, vector<16x128xf32>
    %131 = arith.select %122, %127, %130 : vector<16x128xi1>, vector<16x128xf32>
    %132 = arith.select %119, %126, %131 : vector<16x128xi1>, vector<16x128xf32>
    %133 = vector.extract_strided_slice %111 {offsets = [1, 2], sizes = [16, 128], strides = [1, 1]} : vector<18x130xf32> to vector<16x128xf32>
    %134 = vector.extract_strided_slice %111 {offsets = [2, 1], sizes = [16, 128], strides = [1, 1]} : vector<18x130xf32> to vector<16x128xf32>
    %135 = vector.extract_strided_slice %111 {offsets = [2, 2], sizes = [16, 128], strides = [1, 1]} : vector<18x130xf32> to vector<16x128xf32>
    %136 = vector.extract_strided_slice %111 {offsets = [2, 0], sizes = [16, 128], strides = [1, 1]} : vector<18x130xf32> to vector<16x128xf32>
    %137 = arith.select %125, %135, %136 : vector<16x128xi1>, vector<16x128xf32>
    %138 = arith.select %122, %134, %137 : vector<16x128xi1>, vector<16x128xf32>
    %139 = arith.select %119, %133, %138 : vector<16x128xi1>, vector<16x128xf32>
    %140 = arith.cmpf ogt, %112, %132 : vector<16x128xf32>
    %141 = arith.cmpf oge, %112, %139 : vector<16x128xf32>
    %142 = arith.andi %140, %141 : vector<16x128xi1>
    %cst_27 = arith.constant 2.000000e+01 : f32
    %143 = vector.broadcast %cst_27 : f32 to vector<16x128xf32>
    %144 = arith.cmpf ogt, %112, %143 : vector<16x128xf32>
    %145 = arith.andi %142, %144 : vector<16x128xi1>
    %146 = arith.extui %145 : vector<16x128xi1> to vector<16x128xi32>
    %147 = arith.sitofp %146 : vector<16x128xi32> to vector<16x128xf32>
    %148 = arith.truncf %147 : vector<16x128xf32> to vector<16x128xbf16>
    %c0_28 = arith.constant 0 : index
    %c0_29 = arith.constant 0 : index
    %c0_30 = arith.constant 0 : index
    %149 = vector.load %arg3[%c0_28, %c0_29, %c0_30] : memref<1x16x128xbf16, #tpu.memory_space<vmem>>, vector<1x16x128xbf16>
    %150 = vector.shape_cast %149 : vector<1x16x128xbf16> to vector<16x128xbf16>
    %151 = vector.shape_cast %148 : vector<16x128xbf16> to vector<1x16x128xbf16>
    tpu.vector_store %arg3[%c0_28, %c0_29, %c0_30], %151 {strides = array<i32>} : memref<1x16x128xbf16, #tpu.memory_space<vmem>>, vector<1x16x128xbf16>,
    return
  }
  func.func @transform_0(%arg0: i32, %arg1: i32) -> (i32, i32, i32) {
    %c0_i32 = arith.constant 0 : i32
    %c0_i32_0 = arith.constant 0 : i32
    %c0_i32_1 = arith.constant 0 : i32
    return %arg0, %c0_i32, %c0_i32_0 : i32, i32, i32
  }
  func.func @transform_1(%arg0: i32, %arg1: i32) -> (i32, i32, i32) {
    %c0_i32 = arith.constant 0 : i32
    %c0_i32_0 = arith.constant 0 : i32
    return %arg0, %arg1, %c0_i32 : i32, i32, i32
  }
}

</mosaic_0001>

<bundles_post_ra>
// kernel: tpu_custom_call.1
= control target key start
LH: loop header
LB: loop body
LE: loop exit
PB: predicated region body
PF: predicated region fallthrough
CT: control target
= control target key end

     0   :  { %6 = vsyncpa [#allocation3], 0  ;;  %s2228_s0 = inlined_call_operand.hbm [shape: bf16[2,32,136], index: 0, kind: input, shape index: {}]   ;;  %s2229_s1 = inlined_call_operand.hbm [shape: bf16[2,16,128], index: 1, kind: output, shape index: {}]  }
   0x1   :  { %8 = vsyncpa [#allocation3 + $0x1], 0 }
   0x2   :  { %9 = vsyncpa [#allocation4], 0 }
   0x3   :  { %11 = vsyncpa [#allocation4 + $0x1], 0  ;;  %s1520_s6 = smov 0   ;;  %s1522_s7 = smov 0  }
   0x4   :  { %s1524_s8 = smov 0   ;;  %s1526_s9 = smov 0  }
   0x5   :  { %s1528_s10 = smov 0   ;;  %s1530_s11 = smov 0  }
   0x6 LB: > { %s1255_s12 = sadd.s32 4294967295, %s1496_s11   ;;  %s1256_s13 = sadd.s32 4294967294, %s1496_s11   ;;  %s1496_s11 = sphi %s1530_s11, %s17_s11   ;;  %s1492_s10 = sphi %s1528_s10, %s2250_s10   ;;  %s1488_s9 = sphi %s1526_s9, %s2249_s9   ;;  %s1484_s8 = sphi %s1524_s8, %s2248_s8   ;;  %s1480_s7 = sphi %s1522_s7, %s2247_s7   ;;  %s1476_s6 = sphi %s1520_s6, %s2246_s6  }
   0x7   : > { %s29_s14 = sadd.s32 1, %s1492_s10  ;;  %s36_s15 = sadd.s32 1, %s1484_s8 }
   0x8   : > { %p31_p0 = scmp.ge.s32.totalorder %s29_s14, 2  ;;  %p43_p1 = scmp.ne.s32.totalorder %s1484_s8, %s1480_s7 }
   0x9   : > { %p44_p2 = scmp.eq.s32.totalorder %s1496_s11, 0  ;;  %p49_p3 = scmp.ne.s32.totalorder %s1480_s7, %s1476_s6 }
   0xa   : > { %s2252_s14 = smov (%p31_p0, %s29_s14), 0  ;;  %p50_p5 = scmp.eq.s32.totalorder %s1255_s12, 0 }
   0xb   : > { %p1561_p4 = por %p44_p2, %p43_p1  ;;  %s33_s17 = ssub.s32 %s1492_s10, %s2252_s14 }
   0xc   : > { %p75_p6 = scmp.eq.s32.totalorder %s1255_s12, 1  ;;  %p34_p7 = scmp.eq.s32.totalorder %s33_s17, 0 }
   0xd   : > { %p1567_p8 = por %p50_p5, %p49_p3  ;;  %p81_p10 = scmp.eq.s32.totalorder %s1256_s13, 1 }
   0xe   : > { %p1571_p9 = por %p75_p6, %p43_p1  ;;  %p1304_p13 = scmp.lt.s32.totalorder %s1496_s11, 2 }
   0xf   : > { %s1576_s20 = scalar_select %p34_p7, %s1484_s8, %s36_s15  }
  0x10   : > { %s2233_s19 = scalar_select %p1571_p9, 1, 0 }
  0x11   : > { %p1578_p11 = por %p81_p10, %p49_p3  ;;  %s101_s22 = sand.u32 1, %s1484_s8  }
  0x12   : > { %s1259_s23 = sshll.u32 %s101_s22, 5  ;;  %s1284_s24 = sshll.u32 %s1492_s10, 9 }
  0x13   : > { %s2234_s21 = scalar_select %p1578_p11, 1, 0 }
  0x14   : > { %s1589_s27 = scalar_lea.hbm %s2228_s0, %s1284_s24  ;;  %s105_s28 = scalar_lea.vmem [#allocation2], %s1259_s23 }
  0x15   : > { %s112_s29 = sshll.u32 %s105_s28, 4  ;;  %p1595_p0 = pnand %p1304_p13, %p1561_p4  ;;  %s1591_s29 = int_to_ptr.vmem [resolvable:$true] %s112_s29 }
  0x16   : > { %s1600_s2 = scalar_lea.sflag [#allocation3], %s101_s22  ;;  %s1384_s3 = scalar_lea.hbm %s1589_s27, 512 }
  0x17   : > { %p1385_p2 = scmp.ne.s32.totalorder %s1589_s27, %s1384_s3  ;;  %p1386_p3 = pneg %p1595_p0 }
  0x18   : > { %s1389_s12 = scalar_lea.hbm %s2228_s0, 1024  ;;  %p1390_p4 = scmp.lt.u32.totalorder %s1589_s27, %s2228_s0 }
  0x19   : > { %p1387_p5 = pnand %p1386_p3, %p1385_p2  ;;  %p1391_p7 = scmp.lt.u32.totalorder %s1389_s12, %s1384_s3 }
  0x1a   : > { %p1393_p13 = scmp.lt.u32.totalorder %s1384_s3, %s1589_s27 }
  0x1b   : > { %p1388_p6 = pneg %p1387_p5  ;;  %p1392_p10 = por %p1391_p7, %p1390_p4 }
  0x1d   : > { %p1394_p12 = por %p1393_p13, %p1392_p10 }
  0x1f   : > { %p1395_p1 = pnand %p1394_p12, %p1388_p6 }
  0x21   : > { %1398 = shalt.err (!%p1395_p1)
}
  0x22   : > { %s1399_s16 = scalar_lea.vmem %s1591_s29, 512  ;;  %s1498_s17 = smov [#allocation2]  }
  0x23   : > { %p1400_p2 = scmp.ne.s32.totalorder %s1591_s29, %s1399_s16  ;;  %s1404_s22 = sshll.u32 %s1498_s17, 4  ;;  %s1405_s22 = int_to_ptr.vmem [resolvable:$false] %s1404_s22 }
  0x24   : > { %s1406_s23 = scalar_lea.vmem %s1405_s22, 1024  ;;  %p1407_p9 = scmp.lt.s32.totalorder %s1591_s29, %s1405_s22 }
  0x25   : > { %p1402_p5 = pnand %p1400_p2, %p1386_p3  ;;  %p1408_p4 = scmp.lt.s32.totalorder %s1406_s23, %s1399_s16 }
  0x27   : > { %p1403_p11 = pneg %p1402_p5  ;;  %p1409_p7 = por %p1408_p4, %p1407_p9 }
  0x29   : > { %p1410_p10 = pnand %p1409_p7, %p1403_p11 }
  0x2b   : > { %1413 = shalt.err (!%p1410_p10)
}
  0x2c   : > { %s1499_s24 = smov 128   ;;  %s1500_s25 = smov 8  }
  0x2d   : > { %1299 = dma.hbm_to_vmem [thread:$0]  (!%p1595_p0), %s1589_s27, 512, %s1591_s29, %s1600_s2, %s1499_s24, %s1499_s24, %s1500_s25  }
  0x2e   : > { %p120_p12 = scmp.lt.s32.totalorder %s1496_s11, 3  ;;  %p2236_p1 = scmp.ge.s32.totalorder %s1496_s11, 1 }
  0x30   : > { %p121_p3 = pnand %p2236_p1, %p120_p12 }
  0x31   : > { %s1632_s26 = sand.u32 (!%p121_p3), 1, %s1480_s7  }
  0x32   : > { %124 = sbr.rel (%p121_p3) target bundleno = 820 (0x334), region = 24  ;;  %s1263_s28 = sshll.u32 (!%p121_p3), %s1632_s26, 5 }
  0x33   : > { %s127_s3 = scalar_lea.sflag (!%p121_p3), [#allocation3], %s1632_s26  ;;  %s1636_s4 = scalar_lea.vmem (!%p121_p3), [#allocation2], %s1263_s28 }
  0x39   : > { %1467 = dma.done.wait (%p1567_p8), %s127_s3, 512  }
  0x3a   : > { %1469 = vsyncadd (%p1567_p8), %s127_s3, 4294966784  ;;  %v152_v0 = vld [vmem:[%s1636_s4 + $0x8] sm:$0xff]  ;;  %v153_v1 = vld [vmem:[%s1636_s4 + $0x10] sm:$0xff]  ;;  %vm175_vm0 = vcmask 1043456   ;;  %vm206_vm1 = vcmask 1045504   ;;  %vm253_vm2 = vcmask 1046528  }
  0x3b   : > { %v1645_v2 = vld [vmem:[%s1636_s4 + $0x18] sm:$0x33]  ;;  %v156_v3 = vunpack.c.l.bf16 %v152_v0  ;;  %v1647_v4 = vunpack.c.l.bf16 %v153_v1  ;;  %v1651_v6 = vld [vmem:[%s1636_s4] sm:$0xcc]  ;;  %v1658_v10 = vunpack.c.h.bf16 %v152_v0  ;;  %v1660_v11 = vunpack.c.h.bf16 %v153_v1  ;;  %s1501_s18 = smov 126   ;;  %s1502_s27 = smov 124  }
  0x3c   : > { %v167_v5 = vunpack.c.l.bf16 %v1645_v2  ;;  %v1654_v7 = vld [vmem:[%s1636_s4] sm:$0x88]  ;;  %v154_v8 = vunpack.c.l.bf16 %v1651_v6  ;;  %v168_v31 = vunpack.c.h.bf16 %v1645_v2  ;;  %v155_v59 = vunpack.c.h.bf16 %v1651_v6  ;;  %v160_v60 = vld [vmem:[%s1636_s4 + $0x18] sm:$0x11]  ;;  %s1503_s29 = smov 127   ;;  %s1505_s30 = smov 1  }
  0x3d   : > { %v164_v9 = vunpack.c.l.bf16 %v1654_v7  ;;  %v176_v12 = vrot.slane %v156_v3, 4  ;;  %v178_v13 = vrot.slane %v1647_v4, 4  ;;  %v208_v14 = vrot.slane %v156_v3, 2  ;;  %s1264_s2 = sshll.u32 %s1632_s26, 3  ;;  %s1285_s13 = sshll.u32 %s1488_s9, 7 }
  0x3e   : > { %v213_v15 = vrot.slane %v1647_v4, 2  ;;  %v1666_v16 = vrot.slane %v167_v5, 2  ;;  %v282_v17 = vmul.f32 0.22254893, %v156_v3  ;;  %v1669_v18 = vmul.f32 0.22254893, %v1647_v4  ;;  %s2178_s17 = scalar_lea.hbm %s2229_s1, %s1285_s13 }
  0x3f   : > { %v207_v19 = vrot.slane %v164_v9, 2  ;;  %v179_v20 = vsel %vm175_vm0, %v176_v12, %v178_v13  ;;  %v192_v22 = vadd.f32 %v176_v12, %v154_v8  ;;  %v280_v23 = vmul.f32 0.22254893, %v164_v9  ;;  %s148_s5 = scalar_lea.vmem [#allocation5], %s1264_s2  ;;  %s1156_s22 = scalar_lea.sflag [#allocation4], %s1632_s26 }
  0x40   : > { %v214_v21 = vsel %vm206_vm1, %v208_v14, %v213_v15  ;;  %v194_v24 = vadd.f32 %v179_v20, %v156_v3  ;;  %v218_v25 = vsel %vm206_vm1, %v213_v15, %v1666_v16  ;;  %v297_v27 = vrot.slane %v282_v17, 2  ;;  %s1171_s12 = sshll.u32 %s148_s5, 4  ;;  %p2243_p9 = scmp.ne.s32.totalorder %s2233_s19, 0  ;;  %s2172_s12 = int_to_ptr.vmem [resolvable:$true] %s1171_s12 }
  0x41   : > { %v231_v26 = vadd.f32 %v214_v21, %v156_v3  ;;  %v233_v28 = vadd.f32 %v218_v25, %v1647_v4  ;;  %v302_v29 = vrot.slane %v1669_v18, 2  ;;  %v209_v30 = vsel %vm206_vm1, %v207_v19, %v208_v14  ;;  %s1414_s9 = scalar_lea.vmem %s2172_s12, 128  ;;  %s1507_s23 = smov [#allocation5]  }
  0x42   : > { %v198_v33 = vmul.f32 0.17820325, %v192_v22  ;;  %v229_v34 = vadd.f32 %v209_v30, %v154_v8  ;;  %v296_v35 = vrot.slane %v280_v23, 2  ;;  %v200_v36 = vmul.f32 0.17820325, %v194_v24  ;;  %p1415_p8 = scmp.ne.s32.totalorder %s2172_s12, %s1414_s9  ;;  %s1418_s24 = sshll.u32 %s1507_s23, 4  ;;  %s1419_s24 = int_to_ptr.vmem [resolvable:$false] %s1418_s24 }
  0x43   : > { %v239_v32 = vmul.f32 0.21052228, %v231_v26  ;;  %v1681_v37 = vmul.f32 0.21052228, %v233_v28  ;;  %v177_v38 = vrot.slane %v1658_v10, 4  ;;  %v180_v39 = vrot.slane %v1660_v11, 4  ;;  %p1421_p6 = scmp.lt.s32.totalorder %s2172_s12, %s1419_s24 }
  0x44   : > { %v303_v41 = vsel %vm206_vm1, %v297_v27, %v302_v29  ;;  %v237_v42 = vmul.f32 0.21052228, %v229_v34  ;;  %v211_v43 = vrot.slane %v1658_v10, 2  ;;  %v215_v46 = vrot.slane %v1660_v11, 2  ;;  %p1416_p11 = pnand %p1415_p8, %p2243_p9  ;;  %s1420_s25 = scalar_lea.vmem %s1419_s24, 256 }
  0x45   : > { %v255_v40 = vrot.slane %v239_v32, 1  ;;  %v260_v44 = vrot.slane %v1681_v37, 1  ;;  %v181_v45 = vsel %vm175_vm0, %v177_v38, %v180_v39  ;;  %v219_v47 = vrot.slane %v168_v31, 2  ;;  %p1422_p13 = scmp.lt.s32.totalorder %s1420_s25, %s1414_s9 }
  0x46   : > { %v254_v48 = vrot.slane %v237_v42, 1  ;;  %v298_v49 = vsel %vm206_vm1, %v296_v35, %v297_v27  ;;  %v1694_v50 = vmul.f32 0.22254893, %v1658_v10  ;;  %v285_v51 = vmul.f32 0.22254893, %v1660_v11  ;;  %p1417_p0 = pneg %p1416_p11 }
  0x47   : > { %v261_v52 = vsel %vm253_vm2, %v255_v40, %v260_v44  ;;  %v195_v53 = vadd.f32 %v181_v45, %v1658_v10  ;;  %v216_v54 = vsel %vm206_vm1, %v211_v43, %v215_v46  ;;  %v220_v55 = vsel %vm206_vm1, %v215_v46, %v219_v47  ;;  %p1423_p2 = por %p1422_p13, %p1421_p6 }
  0x48   : > { %v276_v56 = vadd.f32 %v261_v52, %v200_v36  ;;  %v256_v57 = vsel %vm253_vm2, %v254_v48, %v255_v40  ;;  %v232_v58 = vadd.f32 %v216_v54, %v1658_v10  ;;  %v234_v62 = vadd.f32 %v220_v55, %v1660_v11 }
  0x49   : > { %v274_v61 = vadd.f32 %v256_v57, %v198_v33  ;;  %v300_v63 = vrot.slane %v1694_v50, 2  ;;  %v304_v0 = vrot.slane %v285_v51, 2  ;;  %v165_v8 = vunpack.c.h.bf16 %v1654_v7  ;;  %p1424_p5 = pnand %p1423_p2, %p1417_p0 }
  0x4a   : > { %v1709_v1 = vadd.f32 %v303_v41, %v276_v56  ;;  %v240_v3 = vmul.f32 0.21052228, %v232_v58  ;;  %v193_v9 = vadd.f32 %v177_v38, %v155_v59  ;;  %v201_v14 = vmul.f32 0.17820325, %v195_v53 }
  0x4b   : > { %v1712_v12 = vadd.f32 %v298_v49, %v274_v61  ;;  %v242_v15 = vmul.f32 0.21052228, %v234_v62  ;;  %v162_v10 = vunpack.c.h.bf16 %v160_v60  ;;  %v305_v17 = vsel %vm206_vm1, %v300_v63, %v304_v0 }
  0x4c   : > { %366 = vrot.lane.b32.xlu1 %v1709_v1, %s1501_s18  ;;  %v258_v6 = vrot.slane %v240_v3, 1  ;;  %v210_v19 = vrot.slane %v165_v8, 2  ;;  %v281_v20 = vmul.f32 0.22254893, %v165_v8  ;;  %v184_v7 = vrot.slane %v168_v31, 4 }
  0x4d   : > { %362 = vrot.lane.b32.xlu0 %v1712_v12, %s1501_s18  ;;  %v262_v21 = vrot.slane %v242_v15, 1  ;;  %v236_v22 = vadd.f32 %v219_v47, %v162_v10  ;;  %v287_v23 = vmul.f32 0.22254893, %v162_v10  ;;  %v199_v24 = vmul.f32 0.17820325, %v193_v9 }
  0x4e   : > { %v212_v25 = vsel %vm206_vm1, %v210_v19, %v211_v43  ;;  %v161_v26 = vunpack.c.l.bf16 %v160_v60  ;;  %v182_v27 = vrot.slane %v167_v5, 4  ;;  %v185_v32 = vsel %vm175_vm0, %v180_v39, %v184_v7 }
  0x4f   : > { %v263_v28 = vsel %vm253_vm2, %v258_v6, %v262_v21  ;;  %v230_v30 = vadd.f32 %v212_v25, %v155_v59  ;;  %v244_v33 = vmul.f32 0.21052228, %v236_v22  ;;  %v299_v35 = vrot.slane %v281_v20, 2 }
  0x50   : > { %v277_v34 = vadd.f32 %v263_v28, %v201_v14  ;;  %v197_v36 = vadd.f32 %v185_v32, %v1660_v11  ;;  %v308_v31 = vrot.slane %v287_v23, 2  ;;  %v183_v41 = vsel %vm175_vm0, %v178_v13, %v182_v27 }
  0x51   : > { %v238_v38 = vmul.f32 0.21052228, %v230_v30  ;;  %v266_v40 = vrot.slane %v244_v33, 1  ;;  %v235_v2 = vadd.f32 %v1666_v16, %v161_v26  ;;  %v196_v39 = vadd.f32 %v183_v41, %v1647_v4 }
  0x52   : > { %v1729_v5 = vadd.f32 %v305_v17, %v277_v34  ;;  %v203_v42 = vmul.f32 0.17820325, %v197_v36  ;;  %v309_v43 = vsel %vm206_vm1, %v304_v0, %v308_v31  ;;  %v286_v47 = vmul.f32 0.22254893, %v161_v26 }
  0x53   : > { %v257_v45 = vrot.slane %v238_v38, 1  ;;  %v267_v46 = vsel %vm253_vm2, %v262_v21, %v266_v40  ;;  %v243_v11 = vmul.f32 0.21052228, %v235_v2  ;;  %v202_v49 = vmul.f32 0.17820325, %v196_v39 }
  0x54   : > { %368 = vrot.lane.b32.xlu1 %v1729_v5, %s1501_s18  ;;  %v279_v48 = vadd.f32 %v267_v46, %v203_v42  ;;  %v301_v16 = vsel %vm206_vm1, %v299_v35, %v300_v63  ;;  %v306_v51 = vrot.slane %v286_v47, 2  ;;  %v430_v37 = vmul.f32 0.22254893, %v1712_v12 }
  0x55   : > { %v259_v13 = vsel %vm253_vm2, %v257_v45, %v258_v6  ;;  %v264_v50 = vrot.slane %v243_v11, 1  ;;  %vm374_vm3 = vcmask 1031168   ;;  %v475_v7 = vlaneseq }
  0x56   : > { %v275_v52 = vadd.f32 %v259_v13, %v199_v24  ;;  %v1738_v53 = vadd.f32 %v309_v43, %v279_v48  ;;  %v307_v54 = vsel %vm206_vm1, %v302_v29, %v306_v51  ;;  %v433_v29 = vmul.f32 0.22254893, %v1729_v5 }
  0x57   : > { %v265_v4 = vsel %vm253_vm2, %v260_v44, %v264_v50  ;;  %v432_v44 = vmul.f32 0.22254893, %v1709_v1  ;;  %v476_v25 = vshrl.u32 %v475_v7, 7  ;;  %v617_v30 = vand.u32 127, %v475_v7 }
  0x58   : > { %v1746_v55 = vadd.f32 %v301_v16, %v275_v52  ;;  %372 = vrot.lane.b32.xlu1 %v1738_v53, %s1501_s18  ;;  %v278_v56 = vadd.f32 %v265_v4, %v202_v49  ;;  %v435_v27 = vmul.f32 0.22254893, %v1738_v53  ;;  %vm340_vm11 = vcmask 1014784  }
  0x59   : > { %v478_v26 = vadd.s32 16, %v476_v25  ;;  %v1790_v33 = vadd.s32 4294967295, %v617_v30  ;;  %v1806_v36 = vadd.s32 4294967295, %v476_v25  ;;  %vm414_vm12 = vcmask 1039360  }
  0x5a   : > { %364 = vrot.lane.b32.xlu0 %v1746_v55, %s1501_s18  ;;  %v1752_v57 = vadd.f32 %v307_v54, %v278_v56  ;;  %v431_v18 = vmul.f32 0.22254893, %v1746_v55  ;;  %vm547_vm13 = vcmask 1041408   ;;  %vm499_vm15 = vcmask 1042432  }
  0x5b   : > { %v1787_v32 = vadd.s32 4294967295, %v478_v26  ;;  %vm813_vm5 = vcmp.ge.s32.totalorder %v1790_v33, 0  ;;  %vm815_vm6 = vcmp.lt.s32.totalorder %v1790_v33, 16  ;;  %vm804_vm9 = vcmp.ge.s32.totalorder %v1806_v36, 0 }
  0x5c   : > { %330 = vrot.lane.b32.xlu1 %v1746_v55, %s1502_s27  ;;  %v434_v28 = vmul.f32 0.22254893, %v1752_v57  ;;  %vm1796_vm7 = vmand %vm813_vm5, %vm815_vm6  ;;  %vm484_vm1 = vcmp.eq.s32.totalorder %v1806_v36, 0 }
  0x5d   : > { %vm809_vm4 = vcmp.lt.s32.totalorder %v1787_v32, 16  ;;  %vm1811_vm10 = vmand %vm804_vm9, %vm1796_vm7  ;;  %vm540_vm14 = vcmp.eq.s32.totalorder %v1787_v32, 15 }
  0x5e   : > { %370 = vrot.lane.b32.xlu0 %v1752_v57, %s1501_s18  ;;  %vm1802_vm8 = vmand %vm809_vm4, %vm1796_vm7  ;;  %vm623_vm4 = vcmp.eq.s32.totalorder %v1790_v33, 15 }
  0x60   : > { %334 = vrot.lane.b32.xlu1 %v1729_v5, %s1502_s27 }
  0x62   : > { %328 = vrot.lane.b32.xlu0 %v1712_v12, %s1502_s27 }
  0x64   : > { %338 = vrot.lane.b32.xlu1 %v1738_v53, %s1502_s27 }
  0x66   : > { %332 = vrot.lane.b32.xlu0 %v1709_v1, %s1502_s27 }
  0x68   : > { %444 = vrot.lane.b32.xlu1 %v431_v18, %s1501_s18 }
  0x6a   : > { %336 = vrot.lane.b32.xlu0 %v1752_v57, %s1502_s27 }
  0x6c   : > { %448 = vrot.lane.b32.xlu1 %v433_v29, %s1501_s18 }
  0x6e   : > { %442 = vrot.lane.b32.xlu0 %v430_v37, %s1501_s18 }
  0x72   : > { %446 = vrot.lane.b32.xlu0 %v432_v44, %s1501_s18 }
  0xbe   : > { %v367_v58 = vpop.permute.xlu1 %366 }
  0xbf   : > { %v363_v59 = vpop.permute.xlu0 %362 }
  0xc6   : > { %v369_v60 = vpop.permute.xlu1 %368 }
  0xc7   : > { %v376_v62 = vsel %vm374_vm3, %v367_v58, %v369_v60  ;;  %v387_v63 = vadd.f32 %v369_v60, %v1729_v5 }
  0xc8   : > { %v386_v15 = vadd.f32 %v376_v62, %v1709_v1 }
  0xc9   : > { %v393_v17 = vmul.f32 0.21052228, %v387_v63 }
  0xca   : > { %v373_v9 = vpop.permute.xlu1 %372  ;;  %v392_v22 = vmul.f32 0.21052228, %v386_v15 }
  0xcb   : > { %v389_v19 = vadd.f32 %v373_v9, %v1738_v53 }
  0xcc   : > { %v365_v61 = vpop.permute.xlu0 %364 }
  0xcd   : > { %v375_v0 = vsel %vm374_vm3, %v363_v59, %v365_v61  ;;  %v385_v3 = vadd.f32 %v365_v61, %v1746_v55  ;;  %v395_v23 = vmul.f32 0.21052228, %v389_v19 }
  0xce   : > { %v384_v8 = vadd.f32 %v375_v0, %v1712_v12  ;;  %v331_v38 = vpop.permute.xlu1 %330 }
  0xcf   : > { %v391_v14 = vmul.f32 0.21052228, %v385_v3  ;;  %v351_v37 = vadd.f32 %v331_v38, %v1746_v55 }
  0xd0   : > { %v390_v10 = vmul.f32 0.21052228, %v384_v8  ;;  %v371_v6 = vpop.permute.xlu0 %370 }
  0xd1   : > { %404 = vrot.lane.b32.xlu1 %v391_v14, %s1503_s29  ;;  %v377_v20 = vsel %vm374_vm3, %v371_v6, %v373_v9  ;;  %v357_v0 = vmul.f32 0.17820325, %v351_v37 }
  0xd2   : > { %402 = vrot.lane.b32.xlu0 %v390_v10, %s1503_s29  ;;  %v388_v21 = vadd.f32 %v377_v20, %v1752_v57  ;;  %v335_v41 = vpop.permute.xlu1 %334 }
  0xd3   : > { %v353_v48 = vadd.f32 %v335_v41, %v1729_v5 }
  0xd4   : > { %v394_v24 = vmul.f32 0.21052228, %v388_v21  ;;  %v329_v40 = vpop.permute.xlu0 %328 }
  0xd5   : > { %408 = vrot.lane.b32.xlu1 %v393_v17, %s1503_s29  ;;  %v341_v50 = vsel %vm340_vm11, %v329_v40, %v331_v38  ;;  %v359_v51 = vmul.f32 0.17820325, %v353_v48 }
  0xd6   : > { %406 = vrot.lane.b32.xlu0 %v392_v22, %s1503_s29  ;;  %v339_v42 = vpop.permute.xlu1 %338  ;;  %v350_v44 = vadd.f32 %v341_v50, %v1712_v12 }
  0xd7   : > { %v355_v56 = vadd.f32 %v339_v42, %v1738_v53 }
  0xd8   : > { %v333_v2 = vpop.permute.xlu0 %332  ;;  %v356_v3 = vmul.f32 0.17820325, %v350_v44 }
  0xd9   : > { %412 = vrot.lane.b32.xlu1 %v395_v23, %s1503_s29  ;;  %v342_v47 = vsel %vm340_vm11, %v333_v2, %v335_v41  ;;  %v361_v60 = vmul.f32 0.17820325, %v355_v56 }
  0xda   : > { %410 = vrot.lane.b32.xlu0 %v394_v24, %s1503_s29  ;;  %v445_v39 = vpop.permute.xlu1 %444  ;;  %v352_v13 = vadd.f32 %v342_v47, %v1709_v1 }
  0xdc   : > { %v337_v43 = vpop.permute.xlu0 %336  ;;  %v358_v54 = vmul.f32 0.17820325, %v352_v13 }
  0xdd   : > { %452 = vrot.lane.b32.xlu1 %v435_v27, %s1501_s18  ;;  %v343_v52 = vsel %vm340_vm11, %v337_v43, %v339_v42 }
  0xde   : > { %450 = vrot.lane.b32.xlu0 %v434_v28, %s1501_s18  ;;  %v449_v46 = vpop.permute.xlu1 %448  ;;  %v354_v58 = vadd.f32 %v343_v52, %v1752_v57 }
  0xe0   : > { %v443_v45 = vpop.permute.xlu0 %442  ;;  %v360_v9 = vmul.f32 0.17820325, %v354_v58 }
  0xe1   : > { %v454_v7 = vsel %vm374_vm3, %v443_v45, %v445_v39 }
  0xe4   : > { %v447_v11 = vpop.permute.xlu0 %446 }
  0xe5   : > { %v455_v61 = vsel %vm374_vm3, %v447_v11, %v449_v46 }
 0x143   : > { %v405_v49 = vpop.permute.xlu1 %404 }
 0x144   : > { %v403_v16 = vpop.permute.xlu0 %402  ;;  %v425_v14 = vadd.f32 %v405_v49, %v357_v0 }
 0x145   : > { %v415_v62 = vsel %vm414_vm12, %v403_v16, %v405_v49 }
 0x146   : > { %v424_v15 = vadd.f32 %v415_v62, %v356_v3  ;;  %v464_v24 = vadd.f32 %v445_v39, %v425_v14 }
 0x147   : > { %v409_v4 = vpop.permute.xlu1 %408 }
 0x148   : > { %v427_v18 = vadd.f32 %v409_v4, %v359_v51  ;;  %v407_v29 = vpop.permute.xlu0 %406  ;;  %v463_v25 = vadd.f32 %v454_v7, %v424_v15  ;;  %v1287_v11 = vround.rtne.f32 %v464_v24 }
 0x149   : > { %v416_v5 = vsel %vm414_vm12, %v407_v29, %v409_v4 }
 0x14a   : > { %v426_v1 = vadd.f32 %v416_v5, %v358_v54  ;;  %v466_v63 = vadd.f32 %v449_v46, %v427_v18  ;;  %v1286_v13 = vround.rtne.f32 %v463_v25  ;;  %v503_v56 = vrot.slane %v1287_v11, 5 }
 0x14b   : > { %v413_v59 = vpop.permute.xlu1 %412  ;;  %v519_v18 = vrot.slane %v1287_v11, 4  ;;  %v551_v58 = vrot.slane %v1287_v11, 6 }
 0x14c   : > { %v411_v53 = vpop.permute.xlu0 %410  ;;  %v465_v8 = vadd.f32 %v455_v61, %v426_v1  ;;  %v429_v12 = vadd.f32 %v413_v59, %v361_v60  ;;  %v1825_v57 = vround.rtne.f32 %v466_v63  ;;  %v500_v29 = vrot.slane %v1286_v13, 5 }
 0x14d   : > { %v417_v55 = vsel %vm414_vm12, %v411_v53, %v413_v59  ;;  %v516_v37 = vrot.slane %v1286_v13, 4  ;;  %v548_v60 = vrot.slane %v1286_v13, 6 }
 0x14e   : > { %v428_v6 = vadd.f32 %v417_v55, %v360_v9  ;;  %v1827_v20 = vround.rtne.f32 %v465_v8  ;;  %v520_v27 = vrot.slane %v1825_v57, 4  ;;  %v552_v38 = vrot.slane %v1825_v57, 6 }
 0x14f   : > { %v453_v10 = vpop.permute.xlu1 %452  ;;  %v504_v52 = vrot.slane %v1825_v57, 5 }
 0x150   : > { %v468_v17 = vadd.f32 %v453_v10, %v429_v12  ;;  %v451_v19 = vpop.permute.xlu0 %450  ;;  %v517_v40 = vrot.slane %v1827_v20, 4  ;;  %v549_v41 = vrot.slane %v1827_v20, 6  ;;  %v501_v4 = vrot.slane %v1827_v20, 5 }
 0x151   : > { %v456_v21 = vsel %vm374_vm3, %v451_v19, %v453_v10  ;;  %v505_v32 = vsel %vm499_vm15, %v503_v56, %v504_v52  ;;  %v521_v5 = vsel %vm175_vm0, %v519_v18, %v520_v27  ;;  %v553_v62 = vsel %vm547_vm13, %v551_v58, %v552_v38 }
 0x152   : > { %v1291_v22 = vround.rtne.f32 %v468_v17  ;;  %v467_v23 = vadd.f32 %v456_v21, %v428_v6  ;;  %v502_v1 = vsel %vm499_vm15, %v500_v29, %v501_v4  ;;  %v518_v59 = vsel %vm175_vm0, %v516_v37, %v517_v40 }
 0x153   : > { %v533_v61 = vsel %vm484_vm1, %v505_v32, %v521_v5  ;;  %v532_v63 = vsel %vm484_vm1, %v502_v1, %v518_v59  ;;  %v550_v36 = vsel %vm547_vm13, %v548_v60, %v549_v41  ;;  %v573_v6 = vmul.f32 2.0, %v1825_v57 }
 0x154   : > { %v1290_v26 = vround.rtne.f32 %v467_v23  ;;  %v1833_v28 = vrot.slane %v1291_v22, 4  ;;  %v556_v30 = vrot.slane %v1291_v22, 6  ;;  %v508_v2 = vrot.slane %v1291_v22, 5 }
 0x155   : > { %v611_v53 = vsub.f32 %v553_v62, %v533_v61  ;;  %v1889_v0 = vsub.f32 %v550_v36, %v532_v63  ;;  %v575_v8 = vmul.f32 2.0, %v1291_v22  ;;  %v572_v17 = vmul.f32 2.0, %v1827_v20 }
 0x156   : > { %v506_v42 = vrot.slane %v1290_v26, 5  ;;  %v1838_v43 = vrot.slane %v1290_v26, 4  ;;  %v554_v39 = vrot.slane %v1290_v26, 6  ;;  %v1842_v45 = vsel %vm175_vm0, %v520_v27, %v1833_v28 }
 0x157   : > { %v1845_v46 = vsel %vm547_vm13, %v552_v38, %v556_v30  ;;  %v569_v50 = vsel %vm540_vm14, %v508_v2, %v556_v30  ;;  %v574_v9 = vmul.f32 2.0, %v1290_v26  ;;  %v590_v14 = vrot.slane %v575_v8, 5 }
 0x158   : > { %v613_v47 = vsub.f32 %v1845_v46, %v1842_v45  ;;  %v1851_v48 = vsel %vm175_vm0, %v517_v40, %v1838_v43  ;;  %v1854_v49 = vsel %vm547_vm13, %v549_v41, %v554_v39  ;;  %v568_v51 = vsel %vm540_vm14, %v506_v42, %v554_v39 }
 0x159   : > { %v1858_v16 = vsub.f32 %v1854_v49, %v1851_v48  ;;  %v1870_v54 = vsub.f32 %v569_v50, %v1833_v28  ;;  %v1873_v44 = vsub.f32 %v568_v51, %v1838_v43  ;;  %v588_v10 = vrot.slane %v574_v9, 5 }
 0x15a   : > { %711 = vrot.lane.b32.xlu1 %v613_v47, %s1503_s29  ;;  %v762_v3 = vmul.f32 2.0, %v613_v47  ;;  %v571_v19 = vmul.f32 2.0, %v1287_v11  ;;  %v760_v21 = vmul.f32 2.0, %v611_v53  ;;  %v603_v7 = vadd.f32 %v590_v14, %v1833_v28 }
 0x15b   : > { %709 = vrot.lane.b32.xlu0 %v1858_v16, %s1503_s29  ;;  %v761_v55 = vmul.f32 2.0, %v1858_v16  ;;  %v764_v12 = vmul.f32 2.0, %v1870_v54  ;;  %v763_v15 = vmul.f32 2.0, %v1873_v44  ;;  %v570_v22 = vmul.f32 2.0, %v1286_v13 }
 0x15c   : > { %v759_v23 = vmul.f32 2.0, %v1889_v0  ;;  %v602_v24 = vadd.f32 %v588_v10, %v1838_v43  ;;  %v586_v25 = vrot.slane %v573_v6, 5  ;;  %v583_v26 = vrot.slane %v572_v17, 5 }
 0x15d   : > { %v585_v57 = vrot.slane %v571_v19, 5  ;;  %v609_v27 = vadd.f32 %v603_v7, %v569_v50  ;;  %v582_v20 = vrot.slane %v570_v22, 5  ;;  %vm621_vm0 = vcmp.eq.s32.totalorder %v1790_v33, 0 }
 0x15e   : > { %715 = vrot.lane.b32.xlu1 %v1870_v54, %s1503_s29  ;;  %v1911_v30 = vadd.f32 %v602_v24, %v568_v51  ;;  %v591_v2 = vsel %vm499_vm15, %v586_v25, %v590_v14  ;;  %v589_v42 = vsel %vm499_vm15, %v583_v26, %v588_v10 }
 0x15f   : > { %713 = vrot.lane.b32.xlu0 %v1873_v44, %s1503_s29  ;;  %v587_v38 = vsel %vm499_vm15, %v585_v57, %v586_v25  ;;  %v584_v28 = vsel %vm499_vm15, %v582_v20, %v583_v26  ;;  %v601_v39 = vadd.f32 %v591_v2, %v1842_v45  ;;  %v1504_v45 = vmov 0.0  }
 0x160   : > { %v599_v40 = vadd.f32 %v587_v38, %v533_v61  ;;  %v598_v41 = vadd.f32 %v584_v28, %v532_v63 }
 0x161   : > { %v607_v13 = vadd.f32 %v601_v39, %v1845_v46  ;;  %v974_v46 = vrot.slane %v1504_v45, 1 }
 0x162   : > { %738 = vrot.lane.b32.xlu1 %v613_v47, %s1501_s18  ;;  %v605_v43 = vadd.f32 %v599_v40, %v553_v62  ;;  %v1924_v11 = vadd.f32 %v598_v41, %v550_v36  ;;  %v600_v47 = vadd.f32 %v589_v42, %v1851_v48  ;;  %v912_v48 = vrot.slane %v1504_v45, 7 }
 0x163   : > { %736 = vrot.lane.b32.xlu0 %v1858_v16, %s1501_s18  ;;  %v1369_v51 = vpack.i.bf16 %v974_v46, %v974_v46 }
 0x164   : > { %v1932_v50 = vadd.f32 %v600_v47, %v1854_v49  ;;  %v1364_v49 = vpack.i.bf16 %v912_v48, %v912_v48  ;;  %v1379_v52 = vpack.i.bf16 %v974_v46, %v912_v48 }
 0x166   : > { %707 = vrot.lane.b32.xlu1 %v611_v53, %s1503_s29 }
 0x167   : > { %705 = vrot.lane.b32.xlu0 %v1889_v0, %s1503_s29 }
 0x16a   : > { %734 = vrot.lane.b32.xlu1 %v611_v53, %s1501_s18 }
 0x16b   : > { %732 = vrot.lane.b32.xlu0 %v1889_v0, %s1501_s18 }
 0x16e   : > { %777 = vrot.lane.b32.xlu1 %v762_v3, %s1503_s29 }
 0x16f   : > { %775 = vrot.lane.b32.xlu0 %v761_v55, %s1503_s29 }
 0x172   : > { %781 = vrot.lane.b32.xlu1 %v764_v12, %s1503_s29 }
 0x173   : > { %779 = vrot.lane.b32.xlu0 %v763_v15, %s1503_s29 }
 0x176   : > { %773 = vrot.lane.b32.xlu1 %v760_v21, %s1503_s29 }
 0x177   : > { %771 = vrot.lane.b32.xlu0 %v759_v23, %s1503_s29 }
 0x17a   : > { %645 = vrot.lane.b32.xlu1 %v609_v27, %s1503_s29 }
 0x17b   : > { %643 = vrot.lane.b32.xlu0 %v1911_v30, %s1503_s29 }
 0x17e   : > { %676 = vrot.lane.b32.xlu1 %v609_v27, %s1501_s18 }
 0x17f   : > { %674 = vrot.lane.b32.xlu0 %v1911_v30, %s1501_s18 }
 0x182   : > { %637 = vrot.lane.b32.xlu1 %v605_v43, %s1503_s29 }
 0x183   : > { %635 = vrot.lane.b32.xlu0 %v1924_v11, %s1503_s29 }
 0x186   : > { %641 = vrot.lane.b32.xlu1 %v607_v13, %s1503_s29 }
 0x187   : > { %639 = vrot.lane.b32.xlu0 %v1932_v50, %s1503_s29 }
 0x18a   : > { %668 = vrot.lane.b32.xlu1 %v605_v43, %s1501_s18 }
 0x18b   : > { %666 = vrot.lane.b32.xlu0 %v1924_v11, %s1501_s18 }
 0x18e   : > { %672 = vrot.lane.b32.xlu1 %v607_v13, %s1501_s18 }
 0x18f   : > { %670 = vrot.lane.b32.xlu0 %v1932_v50, %s1501_s18 }
 0x192   : > { %742 = vrot.lane.b32.xlu1 %v1870_v54, %s1501_s18 }
 0x193   : > { %740 = vrot.lane.b32.xlu0 %v1873_v44, %s1501_s18 }
 0x196   : > { %1365 = vrot.lane.b32.xlu1 %v1364_v49, %s1503_s29 }
 0x197   : > { %1370 = vrot.lane.b32.xlu0 %v1369_v51, %s1503_s29 }
 0x19a   : > { %1375 = vrot.lane.b32.xlu1 %v1504_v45, %s1503_s29 }
 0x19b   : > { %1380 = vrot.lane.b32.xlu0 %v1379_v52, %s1503_s29 }
 0x1cc   : > { %v712_v4 = vpop.permute.xlu1 %711 }
 0x1cd   : > { %v710_v56 = vpop.permute.xlu0 %709 }
 0x1ce   : > { %v718_v17 = vsel %vm414_vm12, %v710_v56, %v712_v4 }
 0x1cf   : > { %v728_v24 = vsel %vm621_vm0, %v718_v17, %v1858_v16 }
 0x1d0   : > { %v716_v18 = vpop.permute.xlu1 %715 }
 0x1d1   : > { %v714_v29 = vpop.permute.xlu0 %713 }
 0x1d2   : > { %v719_v28 = vsel %vm414_vm12, %v714_v29, %v716_v18 }
 0x1d3   : > { %v730_v56 = vsel %vm621_vm0, %v719_v28, %v1873_v44 }
 0x1d4   : > { %v739_v54 = vpop.permute.xlu1 %738 }
 0x1d5   : > { %v737_v37 = vpop.permute.xlu0 %736 }
 0x1d6   : > { %v745_v26 = vsel %vm374_vm3, %v737_v37, %v739_v54 }
 0x1d7   : > { %v755_v2 = vsel %vm623_vm4, %v718_v17, %v745_v26 }
 0x1d8   : > { %v708_v32 = vpop.permute.xlu1 %707 }
 0x1d9   : > { %v706_v5 = vpop.permute.xlu0 %705 }
 0x1da   : > { %v717_v12 = vsel %vm414_vm12, %v706_v5, %v708_v32 }
 0x1db   : > { %v726_v10 = vsel %vm621_vm0, %v717_v12, %v1889_v0 }
 0x1dc   : > { %v735_v58 = vpop.permute.xlu1 %734 }
 0x1dd   : > { %v733_v1 = vpop.permute.xlu0 %732 }
 0x1de   : > { %v744_v19 = vsel %vm374_vm3, %v733_v1, %v735_v58 }
 0x1df   : > { %v753_v23 = vsel %vm623_vm4, %v717_v12, %v744_v19 }
 0x1e0   : > { %v778_v59 = vpop.permute.xlu1 %777 }
 0x1e1   : > { %v776_v60 = vpop.permute.xlu0 %775 }
 0x1e2   : > { %v784_v22 = vsel %vm414_vm12, %v776_v60, %v778_v59 }
 0x1e3   : > { %v794_v57 = vadd.f32 %v784_v22, %v728_v24 }
 0x1e4   : > { %v782_v61 = vpop.permute.xlu1 %781 }
 0x1e5   : > { %v780_v62 = vpop.permute.xlu0 %779  ;;  %v800_v13 = vadd.f32 %v794_v57, %v755_v2 }
 0x1e6   : > { %v785_v48 = vsel %vm414_vm12, %v780_v62, %v782_v61 }
 0x1e7   : > { %v2007_v1 = vand.u32 2147483647, %v800_v13  ;;  %v796_v44 = vadd.f32 %v785_v48, %v730_v56 }
 0x1e8   : > { %v774_v63 = vpop.permute.xlu1 %773 }
 0x1e9   : > { %v772_v36 = vpop.permute.xlu0 %771 }
 0x1ea   : > { %v783_v15 = vsel %vm414_vm12, %v772_v36, %v774_v63 }
 0x1eb   : > { %v792_v21 = vadd.f32 %v783_v15, %v726_v10 }
 0x1ec   : > { %v646_v53 = vpop.permute.xlu1 %645 }
 0x1ed   : > { %v644_v3 = vpop.permute.xlu0 %643  ;;  %v798_v27 = vadd.f32 %v792_v21, %v753_v23 }
 0x1ee   : > { %v649_v42 = vsel %vm414_vm12, %v644_v3, %v646_v53 }
 0x1ef   : > { %v1984_v46 = vand.u32 2147483647, %v798_v27  ;;  %v660_v18 = vsel %vm621_vm0, %v649_v42, %v1911_v30 }
 0x1f0   : > { %v677_v8 = vpop.permute.xlu1 %676 }
 0x1f1   : > { %v675_v55 = vpop.permute.xlu0 %674 }
 0x1f2   : > { %v680_v40 = vsel %vm374_vm3, %v675_v55, %v677_v8 }
 0x1f4   : > { %v638_v9 = vpop.permute.xlu1 %637 }
 0x1f5   : > { %v636_v14 = vpop.permute.xlu0 %635 }
 0x1f6   : > { %v647_v0 = vsel %vm414_vm12, %v636_v14, %v638_v9 }
 0x1f7   : > { %v656_v41 = vsel %vm621_vm0, %v647_v0, %v1924_v11  ;;  %v691_v11 = vsel %vm623_vm4, %v649_v42, %v680_v40 }
 0x1f8   : > { %v642_v6 = vpop.permute.xlu1 %641  ;;  %v697_v59 = vsub.f32 %v691_v11, %v660_v18 }
 0x1f9   : > { %v640_v7 = vpop.permute.xlu0 %639 }
 0x1fa   : > { %v648_v43 = vsel %vm414_vm12, %v640_v7, %v642_v6  ;;  %v839_v8 = vand.u32 2147483647, %v697_v59 }
 0x1fb   : > { %v658_v29 = vsel %vm621_vm0, %v648_v43, %v1932_v50 }
 0x1fc   : > { %v669_v25 = vpop.permute.xlu1 %668  ;;  %v2046_v15 = vmul.f32 2.4142137, %v839_v8  ;;  %v2048_v10 = vmul.f32 0.41421357, %v839_v8 }
 0x1fd   : > { %v667_v20 = vpop.permute.xlu0 %666 }
 0x1fe   : > { %v678_v38 = vsel %vm374_vm3, %v667_v20, %v669_v25 }
 0x1ff   : > { %v687_v16 = vsel %vm623_vm4, %v647_v0, %v678_v38 }
 0x200   : > { %v693_v39 = vsub.f32 %v687_v16, %v656_v41  ;;  %v673_v47 = vpop.permute.xlu1 %672 }
 0x201   : > { %v671_v49 = vpop.permute.xlu0 %670 }
 0x202   : > { %v835_v51 = vand.u32 2147483647, %v693_v39  ;;  %v679_v52 = vsel %vm374_vm3, %v671_v49, %v673_v47  ;;  %v1989_v4 = vmul.f32 %v798_v27, %v693_v39 }
 0x203   : > { %v689_v54 = vsel %vm623_vm4, %v648_v43, %v679_v52 }
 0x204   : > { %v847_v37 = vadd.f32 %v1984_v46, %v835_v51  ;;  %v695_v32 = vsub.f32 %v689_v54, %v658_v29  ;;  %v2003_v5 = vmul.f32 0.41421357, %v835_v51  ;;  %v2005_v58 = vmul.f32 2.4142137, %v835_v51  ;;  %v743_v60 = vpop.permute.xlu1 %742 }
 0x205   : > { %v741_v30 = vpop.permute.xlu0 %740 }
 0x206   : > { %v837_v61 = vand.u32 2147483647, %v695_v32  ;;  %v746_v62 = vsel %vm374_vm3, %v741_v30, %v743_v60  ;;  %v2012_v50 = vsel %vm1811_vm10, %v847_v37, 0.0  ;;  %vm865_vm5 = vcmp.le.f32.partialorder %v1984_v46, %v2003_v5 }
 0x207   : > { %v757_v63 = vsel %vm623_vm4, %v719_v28, %v746_v62  ;;  %955 = vrot.lane.b32.xlu1 %v2012_v50, %s1505_s30  ;;  %1029 = vrot.lane.b32.xlu0 %v2012_v50, %s1503_s29  ;;  %vm877_vm3 = vcmp.gt.f32.partialorder %v1984_v46, %v2005_v58  ;;  %v2029_v33 = vmul.f32 %v800_v13, %v695_v32  ;;  %v898_v17 = vrot.slane %v2012_v50, 7 }
 0x208   : > { %v849_v31 = vadd.f32 %v2007_v1, %v837_v61  ;;  %v802_v36 = vadd.f32 %v796_v44, %v757_v63  ;;  %v2025_v53 = vmul.f32 0.41421357, %v837_v61  ;;  %v2027_v3 = vmul.f32 2.4142137, %v837_v61  ;;  %v1366_v0 = vpop.permute.xlu1 %1365 }
 0x209   : > { %v971_v21 = vrot.slane %v2012_v50, 1  ;;  %v1371_v24 = vpop.permute.xlu0 %1370  ;;  %v1367_v41 = vunpack.i.l.bf16 %v1366_v0  ;;  %v1368_v18 = vunpack.i.h.bf16 %v1366_v0  ;;  %vm891_vm13 = vcmp.ge.f32.partialorder %v2029_v33, 0.0 }
 0x20a   : > { %v2031_v55 = vand.u32 2147483647, %v802_v36  ;;  %v2035_v9 = vsel %vm1796_vm7, %v849_v31, 0.0  ;;  %v2039_v12 = vmul.f32 %v802_v36, %v697_v59  ;;  %vm867_vm6 = vcmp.le.f32.partialorder %v2007_v1, %v2025_v53 }
 0x20b   : > { %1033 = vrot.lane.b32.xlu0 %v2035_v9, %s1503_s29  ;;  %vm879_vm9 = vcmp.gt.f32.partialorder %v2007_v1, %v2027_v3  ;;  %v899_v35 = vrot.slane %v2035_v9, 7  ;;  %v972_v19 = vrot.slane %v2035_v9, 1  ;;  %v1372_v37 = vunpack.i.l.bf16 %v1371_v24 }
 0x20c   : > { %v851_v14 = vadd.f32 %v2031_v55, %v839_v8  ;;  %vm881_vm7 = vcmp.gt.f32.partialorder %v2031_v55, %v2046_v15  ;;  %vm869_vm10 = vcmp.le.f32.partialorder %v2031_v55, %v2048_v10  ;;  %v1376_v26 = vpop.permute.xlu1 %1375  ;;  %vm893_vm11 = vcmp.ge.f32.partialorder %v2039_v12, 0.0 }
 0x20d   : > { %v973_v7 = vsel %vm253_vm2, %v971_v21, %v972_v19  ;;  %v1381_v25 = vpop.permute.xlu0 %1380  ;;  %v1377_v32 = vunpack.i.l.bf16 %v1376_v26  ;;  %v1373_v60 = vunpack.i.h.bf16 %v1371_v24  ;;  %v1378_v30 = vunpack.i.h.bf16 %v1376_v26 }
 0x20e   : > { %v2052_v34 = vsel %vm1802_vm8, %v851_v14, 0.0  ;;  %vm897_vm8 = vcmask 1040384   ;;  %v1382_v39 = vunpack.i.l.bf16 %v1381_v25  ;;  %vm1074_vm1 = vcmp.gt.f32.partialorder %v2012_v50, 20.0 }
 0x20f   : > { %957 = vrot.lane.b32.xlu0 %v2035_v9, %s1505_s30  ;;  %v2057_v6 = vrot.slane %v2052_v34, 1  ;;  %v900_v23 = vsel %vm897_vm8, %v898_v17, %v899_v35  ;;  %vm1076_vm8 = vcmp.gt.f32.partialorder %v2035_v9, 20.0  ;;  %v1506_v26 = vmov 0.0|0.0  }
 0x211   : > { %989 = vrot.lane.b32.xlu1 %v2057_v6, %s1503_s29  ;;  %v2077_v22 = vsel %vm253_vm2, %v972_v19, %v2057_v6  ;;  %vm889_vm2 = vcmp.ge.f32.partialorder %v1989_v4, 0.0  ;;  %v1383_v19 = vunpack.i.h.bf16 %v1381_v25 }
 0x213   : > { %915 = vrot.lane.b32.xlu0 %v898_v17, %s1503_s29 }
 0x215   : > { %923 = vrot.lane.b32.xlu1 %v899_v35, %s1503_s29 }
 0x217   : > { %901 = vrot.lane.b32.xlu0 %v898_v17, %s1505_s30 }
 0x219   : > { %981 = vrot.lane.b32.xlu1 %v973_v7, %s1503_s29 }
 0x21b   : > { %905 = vrot.lane.b32.xlu0 %v899_v35, %s1505_s30 }
 0x21d   : > { %985 = vrot.lane.b32.xlu1 %v2077_v22, %s1503_s29 }
 0x21f   : > { %919 = vrot.lane.b32.xlu0 %v900_v23, %s1503_s29 }
 0x221   : > { %903 = vrot.lane.b32.xlu1 %v900_v23, %s1505_s30 }
 0x223   : > { %1002 = vrot.lane.b32.xlu0 %v973_v7, %s1505_s30 }
 0x225   : > { %1004 = vrot.lane.b32.xlu1 %v2077_v22, %s1505_s30 }
 0x227   : > { %1037 = vrot.lane.b32.xlu0 %v2052_v34, %s1503_s29 }
 0x229   : > { %1006 = vrot.lane.b32.xlu1 %v2057_v6, %s1505_s30 }
 0x22b   : > { %959 = vrot.lane.b32.xlu0 %v2052_v34, %s1505_s30 }
 0x22d   : > { %1039 = vrot.lane.b32.xlu1 %v1504_v45, %s1503_s29 }
 0x279   : > { %v1030_v57 = vpop.permute.xlu0 %1029  ;;  %v956_v20 = vpop.permute.xlu1 %955 }
 0x27a   : > { %v1041_v8 = vsel %vm414_vm12, %v1030_v57, %v1377_v32 }
 0x27d   : > { %v1034_v27 = vpop.permute.xlu0 %1033 }
 0x27e   : > { %v1042_v4 = vsel %vm414_vm12, %v1034_v27, %v1378_v30 }
 0x281   : > { %v958_v38 = vpop.permute.xlu0 %957 }
 0x283   : > { %v990_v28 = vpop.permute.xlu1 %989 }
 0x284   : > { %v995_v5 = vsel %vm414_vm12, %v990_v28, %v1383_v19 }
 0x285   : > { %v916_v40 = vpop.permute.xlu0 %915 }
 0x286   : > { %v927_v2 = vsel %vm414_vm12, %v916_v40, %v1367_v41 }
 0x287   : > { %v924_v16 = vpop.permute.xlu1 %923 }
 0x288   : > { %v929_v49 = vsel %vm414_vm12, %v924_v16, %v1382_v39 }
 0x289   : > { %v902_v42 = vpop.permute.xlu0 %901 }
 0x28a   : > { %v936_v43 = vsel %vm889_vm2, %v902_v42, %v927_v2 }
 0x28b   : > { %v948_v47 = vsel %vm877_vm3, %v898_v17, %v936_v43  ;;  %v982_v13 = vpop.permute.xlu1 %981 }
 0x28c   : > { %v964_v48 = vsel %vm865_vm5, %v956_v20, %v948_v47  ;;  %v993_v61 = vsel %vm414_vm12, %v982_v13, %v1372_v37 }
 0x28d   : > { %v906_v11 = vpop.permute.xlu0 %905  ;;  %vm1056_vm14 = vcmp.gt.f32.partialorder %v2012_v50, %v964_v48 }
 0x28e   : > { %v940_v51 = vsel %vm893_vm11, %v906_v11, %v929_v49 }
 0x28f   : > { %v986_v52 = vpop.permute.xlu1 %985  ;;  %v952_v56 = vsel %vm881_vm7, %v899_v35, %v940_v51 }
 0x290   : > { %v994_v14 = vsel %vm414_vm12, %v986_v52, %v1373_v60 }
 0x291   : > { %v920_v29 = vpop.permute.xlu0 %919 }
 0x292   : > { %v928_v54 = vsel %vm414_vm12, %v920_v29, %v1368_v18 }
 0x293   : > { %v904_v44 = vpop.permute.xlu1 %903 }
 0x294   : > { %v938_v59 = vsel %vm891_vm13, %v904_v44, %v928_v54 }
 0x295   : > { %v950_v62 = vsel %vm879_vm9, %v900_v23, %v938_v59  ;;  %v1003_v63 = vpop.permute.xlu0 %1002 }
 0x296   : > { %v966_v31 = vsel %vm867_vm6, %v958_v38, %v950_v62  ;;  %v1011_v36 = vsel %vm889_vm2, %v993_v61, %v1003_v63 }
 0x297   : > { %v1023_v17 = vsel %vm877_vm3, %v973_v7, %v1011_v36  ;;  %v1005_v35 = vpop.permute.xlu1 %1004  ;;  %vm1058_vm4 = vcmp.gt.f32.partialorder %v2035_v9, %v966_v31 }
 0x298   : > { %v1050_v21 = vsel %vm865_vm5, %v1041_v8, %v1023_v17  ;;  %v1013_v23 = vsel %vm891_vm13, %v994_v14, %v1005_v35 }
 0x299   : > { %vm1062_vm15 = vcmp.ge.f32.partialorder %v2012_v50, %v1050_v21  ;;  %v1025_v58 = vsel %vm879_vm9, %v2077_v22, %v1013_v23  ;;  %v1038_v7 = vpop.permute.xlu0 %1037 }
 0x29a   : > { %vm1068_vm0 = vmand %vm1056_vm14, %vm1062_vm15  ;;  %v1052_v46 = vsel %vm867_vm6, %v1042_v4, %v1025_v58  ;;  %vm1115_vm15 = vsmask.f32 3328 }
 0x29b   : > { %vm1080_vm5 = vmand %vm1068_vm0, %vm1074_vm1  ;;  %vm1064_vm3 = vcmp.ge.f32.partialorder %v2035_v9, %v1052_v46  ;;  %v1007_v33 = vpop.permute.xlu1 %1006  ;;  %vm1116_vm1 = vsmask.f32 7440 }
 0x29c   : > { %vm1070_vm2 = vmand %vm1058_vm4, %vm1064_vm3  ;;  %v1015_v3 = vsel %vm893_vm11, %v995_v5, %v1007_v33  ;;  %v1273_v53 = vsel %vm1080_vm5, 1.0, %v1504_v45 }
 0x29d   : > { %vm1082_vm9 = vmand %vm1070_vm2, %vm1076_vm8  ;;  %v1027_v1 = vsel %vm881_vm7, %v2057_v6, %v1015_v3  ;;  %v960_v50 = vpop.permute.xlu0 %959  ;;  %vm1078_vm7 = vcmp.gt.f32.partialorder %v2052_v34, 20.0 }
 0x29e   : > { %v1274_v22 = vsel %vm1082_vm9, 1.0, %v1504_v45  ;;  %v968_v24 = vsel %vm869_vm10, %v960_v50, %v952_v56 }
 0x29f   : > { %v1040_v9 = vpop.permute.xlu1 %1039  ;;  %v1098_v0 = vpack.c.bf16 %v1274_v22, %v1273_v53  ;;  %vm1060_vm6 = vcmp.gt.f32.partialorder %v2052_v34, %v968_v24 }
 0x2a0   : > { %v1043_v12 = vsel %vm414_vm12, %v1038_v7, %v1040_v9 }
 0x2a1   : > { %v1054_v25 = vsel %vm869_vm10, %v1043_v12, %v1027_v1  ;;  %v1276_v15 = vcombine.low %v1098_v0, %v1506_v26  ;;  %v1277_v6 = vcombine.high %v1098_v0, %v1506_v26  ;;  %vm1117_vm10 = vmor %vm1115_vm15, %vm1116_vm1 }
 0x2a2   : > { %vm1066_vm11 = vcmp.ge.f32.partialorder %v2052_v34, %v1054_v25 }
 0x2a3   : > { %vm1072_vm13 = vmand %vm1060_vm6, %vm1066_vm11  ;;  %v1119_v57 = vshrl.u32 %v1276_v15, 16  ;;  %v1122_v27 = vshll.u32 %v1276_v15, 16  ;;  %v1128_v20 = vshll.u32 %v1277_v6, 16  ;;  %v1132_v38 = vshrl.u32 %v1277_v6, 16 }
 0x2a4   : > { %vm1084_vm14 = vmand %vm1072_vm13, %vm1078_vm7 }
 0x2a5   : > { %v1275_v55 = vsel %vm1084_vm14, 1.0, %v1504_v45  ;;  %v1121_v10 = vrot.slane %v1119_v57, 4  ;;  %v1124_v28 = vrot.slane %v1122_v27, 5  ;;  %v1130_v40 = vrot.slane %v1128_v20, 5 }
 0x2a6   : > { %v1100_v41 = vpack.c.bf16 %v1275_v55, %v1275_v55  ;;  %v1134_v16 = vrot.slane %v1132_v38, 4 }
 0x2a7   : > { %v1125_v2 = vor.u32 %v1124_v28, %v1121_v10 }
 0x2a8   : > { %v1278_v34 = vcombine.low %v1100_v41, %v1506_v26  ;;  %v1135_v42 = vor.u32 %v1134_v16, %v1130_v40 }
 0x2a9   : > { %v1126_v43 = vrot.slane %v1125_v2, 4 }
 0x2aa   : > { %v1138_v39 = vshll.u32 %v1278_v34, 16  ;;  %v1136_v13 = vrot.slane %v1135_v42, 4 }
 0x2ab   : > { %v1131_v47 = vsel %vm1117_vm10, %v1126_v43, %v1130_v40 }
 0x2ac   : > { %1142 = vrot.lane.b32.xlu1 %v1131_v47, %s1503_s29  ;;  %v1140_v48 = vrot.slane %v1138_v39, 5 }
 0x2ae   : > { %v1141_v49 = vsel %vm1117_vm10, %v1136_v13, %v1140_v48 }
 0x2af   : > { %1144 = vrot.lane.b32.xlu0 %v1141_v49, %s1503_s29 }
 0x31e   : > { %v1143_v45 = vpop.permute.xlu1 %1142 }
 0x31f   : > { %v1146_v11 = vrot.slane %v1143_v45, 4 }
 0x321   : > { %v1149_v51 = vsel %vm414_vm12, %v1143_v45, %v1146_v11  ;;  %v1145_v52 = vpop.permute.xlu0 %1144 }
 0x322   : > { %1153 = vst [vmem:[%s148_s5] sm:$0xf] %v1149_v51  ;;  %v1147_v56 = vrot.slane %v1145_v52, 4 }
 0x324   : > { %v1150_v18 = vsel %vm414_vm12, %v1145_v52, %v1147_v56 }
 0x325   : > { %1154 = vst [vmem:[%s148_s5 + $0x4] sm:$0xf] %v1150_v18 }
 0x326   : > { %1427 = shalt.err (!%p1424_p5)
}
 0x327   : > { %s1428_s28 = scalar_lea.hbm %s2178_s17, 128  ;;  %s1432_s18 = scalar_lea.hbm %s2229_s1, 256 }
 0x328   : > { %p1429_p4 = scmp.ne.s32.totalorder %s2178_s17, %s1428_s28  ;;  %p1433_p12 = scmp.lt.u32.totalorder %s2178_s17, %s2229_s1 }
 0x329   : > { %p1434_p1 = scmp.lt.u32.totalorder %s1432_s18, %s1428_s28  ;;  %p1436_p8 = scmp.lt.u32.totalorder %s1428_s28, %s2178_s17 }
 0x32a   : > { %p1430_p7 = pnand %p1429_p4, %p2243_p9 }
 0x32b   : > { %p1435_p3 = por %p1434_p1, %p1433_p12 }
 0x32c   : > { %p1431_p10 = pneg %p1430_p7 }
 0x32d   : > { %p1437_p11 = por %p1436_p8, %p1435_p3 }
 0x32f   : > { %p1438_p0 = pnand %p1437_p11, %p1431_p10 }
 0x331   : > { %1441 = shalt.err (!%p1438_p0)
}
 0x332   : > { %s1508_s30 = smov 64   ;;  %s1509_s2 = smov 4  }
 0x333   : > { %1294 = dma.vmem_to_hbm [thread:$0]  (%p2243_p9), %s2172_s12, 128, %s2178_s17, %s1156_s22, %s1508_s30, %s1508_s30, %s1509_s2  }
 0x334 PF: > { %s1186_s5 = sand.u32 1, %s1476_s6   ;;  %p2244_p6 = scmp.ne.s32.totalorder %s2234_s21, 0 }
 0x335   : > { %p2245_p13 = scmp.ge.s32.totalorder %s1496_s11, 2  ;;  %s1187_s13 = scalar_lea.sflag [#allocation4], %s1186_s5 }
 0x337   : > { %p1301_p2 = pnand %p2245_p13, %p2244_p6 }
 0x339   : > { %1471 = dma.done.wait (!%p1301_p2), %s1187_s13, 128  }
 0x33a   : > { %1473 = vsyncadd (!%p1301_p2), %s1187_s13, 4294967168  ;;  %s17_s11 = sadd.s32 1, %s1496_s11   ;;  %s2246_s6 = smov %s1480_s7 }
 0x33b   : > { %p14_p5 = scmp.ge.s32.totalorder %s17_s11, 4   ;;  %s2247_s7 = smov %s1484_s8 }
 0x33c   : > { %s2248_s8 = smov %s1576_s20  ;;  %s2249_s9 = smov %s1492_s10 }
 0x33d   : > { %s2250_s10 = smov %s2252_s14  ;;  %16 = sbr.rel (!%p14_p5) target bundleno = 6 (0x6), region = 69 }
 0x344   :  { %1192 = vsyncpa [#allocation3], 1 }
 0x345   :  { %1194 = vsyncpa [#allocation3 + $0x1], 1 }
 0x346   :  { %1195 = vsyncpa [#allocation4], 1 }
 0x347   :  { %1197 = vsyncpa [#allocation4 + $0x1], 1 }

</bundles_post_ra>
